<compile_context>
chip_gen: v6e
topology: v6e:2x2x1
jax: 0.10.0
libtpu: 0.0.40
codegen_flags: <defaults>
</compile_context>

<pallas_src>
import jax
import jax.numpy as jnp
from jax.experimental import pallas as pl
from jax.experimental.pallas import tpu as pltpu

LATENT_DIM = 256
CONTEXT_DIM = 64
HIDDEN_CTX = 64          # context_encoder output (logical width)
HIDDEN_CTX_PAD = 128     # padded to a full lane width
OUT_DIM = 256

MAX_B_TILE = 1024        # amortizes per-step overhead; ~5 MiB/step worst case (f32)
MIN_SPLIT_B = 256        # above this, split into >=2 tiles (feeds both v7x TCs)


def _domain_adapt_kernel(latent_ref, ctx_ref, w1_ref, b1_ref,
                         w2l_ref, w2c_ref, b2_ref, out_ref):
    wdt = w2l_ref.dtype  # weight compute dtype (bf16 by default)

    # In-kernel activation cast: a few VALU ops that hide under DMA, instead of
    # a separate full-batch HBM read+write in the wrapper.
    lat = latent_ref[...].astype(wdt)
    ctx = ctx_ref[...].astype(wdt)

    # context_encoder: Linear + ReLU (hidden dim zero-padded to 128 lanes;
    # f32 MXU accumulation, f32 bias + ReLU).
    ctx_feat = jnp.dot(ctx, w1_ref[...],
                       preferred_element_type=jnp.float32) + b1_ref[...]
    ctx_feat = jnp.maximum(ctx_feat, 0.0)

    # fusion Linear on the (implicitly concatenated) [latent | ctx_feat] + ReLU.
    fused = (jnp.dot(lat, w2l_ref[...], preferred_element_type=jnp.float32)
             + jnp.dot(ctx_feat.astype(wdt), w2c_ref[...],
                       preferred_element_type=jnp.float32)
             + b2_ref[...])
    out_ref[...] = jnp.maximum(fused, 0.0).astype(out_ref.dtype)


def prepare_params(params, compute_dtype=jnp.bfloat16):
    """One-time weight layout prep (hoisted out of the per-call path).

    - transpose nn.Linear [out, in] weights to [in, out]
    - split W2 into latent / context halves (eliminates the concat)
    - zero-pad the context hidden dim 64 -> 128 (keeps math exact, full lanes)
    - cast weights to compute_dtype (bf16 default; accumulation stays f32)
    """
    w1_t = jnp.asarray(params["w1"]).T                        # [CONTEXT_DIM, 64]
    w1_t = jnp.pad(w1_t, ((0, 0), (0, HIDDEN_CTX_PAD - HIDDEN_CTX)))
    b1 = jnp.pad(jnp.asarray(params["b1"]),
                 (0, HIDDEN_CTX_PAD - HIDDEN_CTX)).reshape(1, HIDDEN_CTX_PAD)
    w2 = jnp.asarray(params["w2"])                            # [OUT, LATENT+64]
    w2_lat_t = w2[:, :LATENT_DIM].T                           # [LATENT, OUT]
    w2_ctx_t = jnp.pad(w2[:, LATENT_DIM:].T,                  # [128, OUT]
                       ((0, HIDDEN_CTX_PAD - HIDDEN_CTX), (0, 0)))
    b2 = jnp.asarray(params["b2"]).reshape(1, OUT_DIM)
    return {
        "w1_t": w1_t.astype(compute_dtype),
        "b1": b1.astype(jnp.float32),        # bias + ReLU epilogue stays f32
        "w2_lat_t": w2_lat_t.astype(compute_dtype),
        "w2_ctx_t": w2_ctx_t.astype(compute_dtype),
        "b2": b2.astype(jnp.float32),
    }


def _round_up(x, m):
    return (x + m - 1) // m * m


def _pick_b_tile(b):
    if b <= MIN_SPLIT_B:
        # Single grid step on the full (small) batch: launch-overhead bound,
        # extra grid steps only add ~600-cycle pipeline setup each.  Block
        # shape equals the full array dim, so any B is legal (no padding).
        return b
    # Mid/large batch: tile of ceil(B/2) (rounded to the sublane pack) so the
    # grid is >= 2 (both v7x TensorCores get work), capped at MAX_B_TILE to
    # amortize per-step overhead while staying small in VMEM.  The final
    # partial block is masked by Pallas; no wrapper-side pad/slice needed.
    return min(MAX_B_TILE, _round_up(pl.cdiv(b, 2), 8))


def domain_adaptive_forward(latent_state, env_context, prepped):
    """latent_state: [B, LATENT_DIM], env_context: [B, CONTEXT_DIM] -> [B, OUT_DIM]."""
    B = latent_state.shape[0]
    b_tile = _pick_b_tile(B)
    grid = (pl.cdiv(B, b_tile),)
    out_dtype = latent_state.dtype

    return pl.pallas_call(
        _domain_adapt_kernel,
        out_shape=jax.ShapeDtypeStruct((B, OUT_DIM), out_dtype),
        grid_spec=pltpu.PrefetchScalarGridSpec(
            num_scalar_prefetch=0,
            grid=grid,
            in_specs=[
                pl.BlockSpec((b_tile, LATENT_DIM), lambda i: (i, 0)),      # latent tile
                pl.BlockSpec((b_tile, CONTEXT_DIM), lambda i: (i, 0)),     # context tile
                pl.BlockSpec((CONTEXT_DIM, HIDDEN_CTX_PAD), lambda i: (0, 0)),
                pl.BlockSpec((1, HIDDEN_CTX_PAD), lambda i: (0, 0)),
                pl.BlockSpec((LATENT_DIM, OUT_DIM), lambda i: (0, 0)),
                pl.BlockSpec((HIDDEN_CTX_PAD, OUT_DIM), lambda i: (0, 0)),
                pl.BlockSpec((1, OUT_DIM), lambda i: (0, 0)),
            ],
            out_specs=pl.BlockSpec((b_tile, OUT_DIM), lambda i: (i, 0)),
        ),
        compiler_params=pltpu.CompilerParams(
            dimension_semantics=("parallel",)),
    )(latent_state, env_context, prepped["w1_t"], prepped["b1"],
      prepped["w2_lat_t"], prepped["w2_ctx_t"], prepped["b2"])


def _reference_forward(latent_state, env_context, params):
    ctx_feat = jnp.maximum(env_context @ params["w1"].T + params["b1"], 0.0)
    fused = jnp.concatenate([latent_state, ctx_feat], axis=1)
    return jnp.maximum(fused @ params["w2"].T + params["b2"], 0.0)


def _init_params(key):
    k1, k2, k3, k4 = jax.random.split(key, 4)
    # nn.Linear shapes: weight [out, in], bias [out]
    w1 = jax.random.normal(k1, (HIDDEN_CTX, CONTEXT_DIM), jnp.float32) * 0.05
    b1 = jax.random.normal(k2, (HIDDEN_CTX,), jnp.float32) * 0.01
    w2 = jax.random.normal(k3, (OUT_DIM, LATENT_DIM + HIDDEN_CTX), jnp.float32) * 0.05
    b2 = jax.random.normal(k4, (OUT_DIM,), jnp.float32) * 0.01
    return {"w1": w1, "b1": b1, "w2": w2, "b2": b2}


if __name__ == "__main__":
    key = jax.random.PRNGKey(0)
    kp, kl, kc, kl2, kc2 = jax.random.split(key, 5)

    params = _init_params(kp)
    prepped_bf16 = prepare_params(params)                         # default bf16
    prepped_f32 = prepare_params(params, compute_dtype=jnp.float32)

    # --- small batch (single grid step, module-sized feature dims) ---
    B = 8
    latent_state = jax.random.normal(kl, (B, LATENT_DIM), jnp.float32)
    env_context = jax.random.normal(kc, (B, CONTEXT_DIM), jnp.float32)
    ref = _reference_forward(latent_state, env_context, params)

    out_f32 = jax.block_until_ready(
        domain_adaptive_forward(latent_state, env_context, prepped_f32))
    assert out_f32.shape == (B, OUT_DIM)
    assert jnp.allclose(out_f32, ref, atol=1e-4, rtol=1e-4), "small-batch f32 mismatch"

    out_bf16 = jax.block_until_ready(
        domain_adaptive_forward(latent_state, env_context, prepped_bf16))
    assert jnp.allclose(out_bf16, ref, atol=1e-1, rtol=1e-1), "small-batch bf16 mismatch"

    # --- larger, non-multiple batch: grid >= 2 with a masked partial block ---
    B2 = 300
    latent2 = jax.random.normal(kl2, (B2, LATENT_DIM), jnp.float32)
    context2 = jax.random.normal(kc2, (B2, CONTEXT_DIM), jnp.float32)
    ref2 = _reference_forward(latent2, context2, params)

    out2_f32 = jax.block_until_ready(
        domain_adaptive_forward(latent2, context2, prepped_f32))
    assert out2_f32.shape == (B2, OUT_DIM)
    assert jnp.allclose(out2_f32, ref2, atol=1e-4, rtol=1e-4), "tiled f32 mismatch"

    out2_bf16 = jax.block_until_ready(
        domain_adaptive_forward(latent2, context2, prepped_bf16))
    assert jnp.allclose(out2_bf16, ref2, atol=1e-1, rtol=1e-1), "tiled bf16 mismatch"

    print("KERNEL_OK")
</pallas_src>

<mosaic_0001>
module attributes {stable_mosaic.version = 11 : i64} {
  func.func @_domain_adapt_kernel(%arg0: i32, %arg1: memref<8x256xf32, #tpu.memory_space<vmem>>, %arg2: memref<8x64xf32, #tpu.memory_space<vmem>>, %arg3: memref<64x128xf32, #tpu.memory_space<vmem>>, %arg4: memref<1x128xf32, #tpu.memory_space<vmem>>, %arg5: memref<256x256xf32, #tpu.memory_space<vmem>>, %arg6: memref<128x256xf32, #tpu.memory_space<vmem>>, %arg7: memref<1x256xf32, #tpu.memory_space<vmem>>, %arg8: memref<8x256xf32, #tpu.memory_space<vmem>>) attributes {dimension_semantics = [#tpu.dimension_semantics<parallel>], iteration_bounds = array<i64: 1>, scalar_prefetch = 0 : i64, scratch_operands = 0 : i64, tpu.core_type = #tpu.core_type<tc>, window_params = [{transform_indices = @transform_0, window_bounds = array<i64: 8, 256>}, {transform_indices = @transform_1, window_bounds = array<i64: 8, 64>}, {pipeline_mode = #tpu.pipeline_mode<synchronous>, transform_indices = @transform_2, window_bounds = array<i64: 64, 128>}, {pipeline_mode = #tpu.pipeline_mode<synchronous>, transform_indices = @transform_3, window_bounds = array<i64: 1, 128>}, {pipeline_mode = #tpu.pipeline_mode<synchronous>, transform_indices = @transform_4, window_bounds = array<i64: 256, 256>}, {pipeline_mode = #tpu.pipeline_mode<synchronous>, transform_indices = @transform_5, window_bounds = array<i64: 128, 256>}, {pipeline_mode = #tpu.pipeline_mode<synchronous>, transform_indices = @transform_6, window_bounds = array<i64: 1, 256>}, {transform_indices = @transform_7, window_bounds = array<i64: 8, 256>}]} {
    %c0 = arith.constant 0 : index
    %c0_0 = arith.constant 0 : index
    %0 = vector.load %arg1[%c0, %c0_0] : memref<8x256xf32, #tpu.memory_space<vmem>>, vector<8x256xf32>
    %c0_1 = arith.constant 0 : index
    %c0_2 = arith.constant 0 : index
    %1 = vector.load %arg2[%c0_1, %c0_2] : memref<8x64xf32, #tpu.memory_space<vmem>>, vector<8x64xf32>
    %c0_3 = arith.constant 0 : index
    %c0_4 = arith.constant 0 : index
    %2 = vector.load %arg3[%c0_3, %c0_4] : memref<64x128xf32, #tpu.memory_space<vmem>>, vector<64x128xf32>
    %cst = arith.constant dense<0.000000e+00> : vector<8x128xf32>
    %3 = tpu.matmul %1, %2, %cst {dimension_numbers = #tpu.dot_dimension_numbers<[1], [0], [0], [1], [0, 0, 1, 1], [], []>} : vector<8x64xf32>, vector<64x128xf32>, vector<8x128xf32> -> vector<8x128xf32>
    %c0_5 = arith.constant 0 : index
    %c0_6 = arith.constant 0 : index
    %4 = vector.load %arg4[%c0_5, %c0_6] : memref<1x128xf32, #tpu.memory_space<vmem>>, vector<1x128xf32>
    %5 = vector.broadcast %4 : vector<1x128xf32> to vector<8x128xf32>
    %6 = arith.addf %3, %5 : vector<8x128xf32>
    %cst_7 = arith.constant 0.000000e+00 : f32
    %7 = vector.broadcast %cst_7 : f32 to vector<8x128xf32>
    %8 = arith.maximumf %6, %7 : vector<8x128xf32>
    %c0_8 = arith.constant 0 : index
    %c0_9 = arith.constant 0 : index
    %9 = vector.load %arg5[%c0_8, %c0_9] : memref<256x256xf32, #tpu.memory_space<vmem>>, vector<256x256xf32>
    %cst_10 = arith.constant dense<0.000000e+00> : vector<8x256xf32>
    %10 = tpu.matmul %0, %9, %cst_10 {dimension_numbers = #tpu.dot_dimension_numbers<[1], [0], [0], [1], [0, 0, 1, 1], [], []>} : vector<8x256xf32>, vector<256x256xf32>, vector<8x256xf32> -> vector<8x256xf32>
    %c0_11 = arith.constant 0 : index
    %c0_12 = arith.constant 0 : index
    %11 = vector.load %arg6[%c0_11, %c0_12] : memref<128x256xf32, #tpu.memory_space<vmem>>, vector<128x256xf32>
    %cst_13 = arith.constant dense<0.000000e+00> : vector<8x256xf32>
    %12 = tpu.matmul %8, %11, %cst_13 {dimension_numbers = #tpu.dot_dimension_numbers<[1], [0], [0], [1], [0, 0, 1, 1], [], []>} : vector<8x128xf32>, vector<128x256xf32>, vector<8x256xf32> -> vector<8x256xf32>
    %13 = arith.addf %10, %12 : vector<8x256xf32>
    %c0_14 = arith.constant 0 : index
    %c0_15 = arith.constant 0 : index
    %14 = vector.load %arg7[%c0_14, %c0_15] : memref<1x256xf32, #tpu.memory_space<vmem>>, vector<1x256xf32>
    %15 = vector.broadcast %14 : vector<1x256xf32> to vector<8x256xf32>
    %16 = arith.addf %13, %15 : vector<8x256xf32>
    %cst_16 = arith.constant 0.000000e+00 : f32
    %17 = vector.broadcast %cst_16 : f32 to vector<8x256xf32>
    %18 = arith.maximumf %16, %17 : vector<8x256xf32>
    %c0_17 = arith.constant 0 : index
    %c0_18 = arith.constant 0 : index
    %19 = vector.load %arg8[%c0_17, %c0_18] : memref<8x256xf32, #tpu.memory_space<vmem>>, vector<8x256xf32>
    tpu.vector_store %arg8[%c0_17, %c0_18], %18 {strides = array<i32>} : memref<8x256xf32, #tpu.memory_space<vmem>>, vector<8x256xf32>,
    return
  }
  func.func @transform_0(%arg0: i32) -> (i32, i32) {
    %c0_i32 = arith.constant 0 : i32
    %c0_i32_0 = arith.constant 0 : i32
    return %arg0, %c0_i32 : i32, i32
  }
  func.func @transform_1(%arg0: i32) -> (i32, i32) {
    %c0_i32 = arith.constant 0 : i32
    %c0_i32_0 = arith.constant 0 : i32
    return %arg0, %c0_i32 : i32, i32
  }
  func.func @transform_2(%arg0: i32) -> (i32, i32) {
    %c0_i32 = arith.constant 0 : i32
    %c0_i32_0 = arith.constant 0 : i32
    %c0_i32_1 = arith.constant 0 : i32
    return %c0_i32, %c0_i32_0 : i32, i32
  }
  func.func @transform_3(%arg0: i32) -> (i32, i32) {
    %c0_i32 = arith.constant 0 : i32
    %c0_i32_0 = arith.constant 0 : i32
    %c0_i32_1 = arith.constant 0 : i32
    return %c0_i32, %c0_i32_0 : i32, i32
  }
  func.func @transform_4(%arg0: i32) -> (i32, i32) {
    %c0_i32 = arith.constant 0 : i32
    %c0_i32_0 = arith.constant 0 : i32
    %c0_i32_1 = arith.constant 0 : i32
    return %c0_i32, %c0_i32_0 : i32, i32
  }
  func.func @transform_5(%arg0: i32) -> (i32, i32) {
    %c0_i32 = arith.constant 0 : i32
    %c0_i32_0 = arith.constant 0 : i32
    %c0_i32_1 = arith.constant 0 : i32
    return %c0_i32, %c0_i32_0 : i32, i32
  }
  func.func @transform_6(%arg0: i32) -> (i32, i32) {
    %c0_i32 = arith.constant 0 : i32
    %c0_i32_0 = arith.constant 0 : i32
    %c0_i32_1 = arith.constant 0 : i32
    return %c0_i32, %c0_i32_0 : i32, i32
  }
  func.func @transform_7(%arg0: i32) -> (i32, i32) {
    %c0_i32 = arith.constant 0 : i32
    %c0_i32_0 = arith.constant 0 : i32
    return %arg0, %c0_i32 : i32, i32
  }
}

</mosaic_0001>

<bundles_post_ra>
// kernel: tpu_custom_call.1
= control target key start
LH: loop header
LB: loop body
LE: loop exit
PB: predicated region body
PF: predicated region fallthrough
CT: control target
= control target key end

     0   :  { %12 = vsyncpa [#allocation3], 0  ;;  %s719_s0 = inlined_call_operand.hbm [shape: f32[8,256], index: 0, kind: input, shape index: {}]   ;;  %s720_s1 = inlined_call_operand.hbm [shape: f32[8,64], index: 1, kind: input, shape index: {}]   ;;  %s721_s2 = inlined_call_operand.hbm [shape: f32[64,128], index: 2, kind: input, shape index: {}]   ;;  %s722_s3 = inlined_call_operand.vmem [shape: f32[1,128], index: 3, kind: input, shape index: {}]   ;;  %s723_s4 = inlined_call_operand.hbm [shape: f32[256,256], index: 4, kind: input, shape index: {}]   ;;  %s724_s5 = inlined_call_operand.hbm [shape: f32[128,256], index: 5, kind: input, shape index: {}]   ;;  %s725_s6 = inlined_call_operand.vmem [shape: f32[1,256], index: 6, kind: input, shape index: {}]   ;;  %s726_s7 = inlined_call_operand.hbm [shape: f32[8,256], index: 7, kind: output, shape index: {}]  }
   0x1   :  { %13 = vsyncpa [#allocation6], 0 }
   0x2   :  { %14 = vsyncpa [#allocation9], 0 }
   0x3   :  { %15 = vsyncpa [#allocation4], 0  ;;  %s627_s24 = smov [#allocation5]   ;;  %s628_s26 = smov [#allocation8]  }
   0x4   :  { %s32_s25 = sshll.u32 %s627_s24, 4  ;;  %s55_s27 = sshll.u32 %s628_s26, 4  ;;  %s33_s25 = int_to_ptr.vmem [resolvable:$true] %s32_s25  ;;  %s56_s27 = int_to_ptr.vmem [resolvable:$true] %s55_s27 }
   0x5   :  { %s507_s28 = scalar_lea.vmem %s33_s25, 128  ;;  %p512_p1 = scmp.lt.s32.totalorder %s33_s25, %s33_s25 }
   0x6   :  { %p508_p0 = scmp.ne.s32.totalorder %s33_s25, %s507_s28  ;;  %p513_p2 = scmp.lt.s32.totalorder %s507_s28, %s507_s28 }
   0x8   :  { %p514_p3 = por %p513_p2, %p512_p1 }
   0xa   :  { %p515_p4 = pnand %p514_p3, %p508_p0 }
   0xc   :  { %518 = shalt.err (!%p515_p4)
}
   0xd   :  { %35 = dma.hbm_to_vmem [thread:$0]  %s720_s1, 128, %s33_s25, [#allocation6]  }
   0xe   :  { %s527_s8 = scalar_lea.vmem %s56_s27, 8192  ;;  %p532_p6 = scmp.lt.s32.totalorder %s56_s27, %s56_s27 }
   0xf   :  { %p528_p5 = scmp.ne.s32.totalorder %s56_s27, %s527_s8  ;;  %p533_p7 = scmp.lt.s32.totalorder %s527_s8, %s527_s8 }
  0x11   :  { %p534_p8 = por %p533_p7, %p532_p6 }
  0x13   :  { %p535_p9 = pnand %p534_p8, %p528_p5 }
  0x15   :  { %538 = shalt.err (!%p535_p9)
}
  0x16   :  { %s629_s9 = smov 256   ;;  %s630_s10 = smov 16  }
  0x17   :  { %61 = dma.hbm_to_vmem [thread:$0]  %s723_s4, 8192, %s56_s27, [#allocation9], %s629_s9, %s629_s9, %s630_s10  }
  0x18   :  { %s631_s13 = smov [#allocation2]   ;;  %s632_s15 = smov [#allocation7]  }
  0x19   :  { %s22_s14 = sshll.u32 %s631_s13, 4  ;;  %s41_s1 = sshll.u32 %s632_s15, 4  ;;  %s23_s14 = int_to_ptr.vmem [resolvable:$true] %s22_s14  ;;  %s42_s1 = int_to_ptr.vmem [resolvable:$true] %s41_s1 }
  0x1a   :  { %s547_s16 = scalar_lea.vmem %s23_s14, 256  ;;  %p552_p11 = scmp.lt.s32.totalorder %s23_s14, %s23_s14 }
  0x1b   :  { %p548_p10 = scmp.ne.s32.totalorder %s23_s14, %s547_s16  ;;  %p553_p12 = scmp.lt.s32.totalorder %s547_s16, %s547_s16 }
  0x1d   :  { %p554_p13 = por %p553_p12, %p552_p11 }
  0x1f   :  { %p555_p0 = pnand %p554_p13, %p548_p10 }
  0x21   :  { %558 = shalt.err (!%p555_p0)
}
  0x22   :  { %25 = dma.hbm_to_vmem [thread:$0]  %s719_s0, 256, %s23_s14, [#allocation3]  }
  0x23   :  { %s567_s19 = scalar_lea.vmem %s42_s1, 1024  ;;  %p572_p2 = scmp.lt.s32.totalorder %s42_s1, %s42_s1 }
  0x24   :  { %p568_p1 = scmp.ne.s32.totalorder %s42_s1, %s567_s19  ;;  %p573_p3 = scmp.lt.s32.totalorder %s567_s19, %s567_s19 }
  0x26   :  { %p574_p4 = por %p573_p3, %p572_p2 }
  0x28   :  { %p575_p5 = pnand %p574_p4, %p568_p1 }
  0x2a   :  { %578 = shalt.err (!%p575_p5)
}
  0x2b   :  { %s633_s4 = smov 128   ;;  %s634_s20 = smov 8  }
  0x2c   :  { %47 = dma.hbm_to_vmem [thread:$0]  %s721_s2, 1024, %s42_s1, [#allocation6], %s633_s4, %s633_s4, %s634_s20  }
  0x2d   :  { %s635_s23 = smov [#allocation10]  }
  0x2e   :  { %s67_s24 = sshll.u32 %s635_s23, 4  ;;  %s68_s24 = int_to_ptr.vmem [resolvable:$true] %s67_s24 }
  0x2f   :  { %s587_s25 = scalar_lea.vmem %s68_s24, 4096  ;;  %p592_p7 = scmp.lt.s32.totalorder %s68_s24, %s68_s24 }
  0x30   :  { %p588_p6 = scmp.ne.s32.totalorder %s68_s24, %s587_s25  ;;  %p593_p8 = scmp.lt.s32.totalorder %s587_s25, %s587_s25 }
  0x32   :  { %p594_p9 = por %p593_p8, %p592_p7 }
  0x34   :  { %p595_p10 = pnand %p594_p9, %p588_p6 }
  0x36   :  { %598 = shalt.err (!%p595_p10)
}
  0x37   :  { %73 = dma.hbm_to_vmem [thread:$0]  %s724_s5, 4096, %s68_s24, [#allocation9], %s629_s9, %s629_s9, %s630_s10  }
  0x38   :  { %619 = dma.done.wait [#allocation3], 256  }
  0x39   :  { %620 = vsyncadd [#allocation3], 4294967040 }
  0x3a   :  { %621 = dma.done.wait [#allocation6], 1152  }
  0x3b   :  { %622 = vsyncadd [#allocation6], 4294966144 }
  0x3c   :  { %623 = dma.done.wait [#allocation9], 12288  }
  0x3d   :  { %624 = vsyncadd [#allocation9], 4294955008  ;;  %v636_v0 = vmov 0.0   ;;  %vm637_vm0 = vmmov 0   ;;  %v101_v1 = vld [vmem:[#allocation7 + $0x38] sm:$0xff]  ;;  %v100_v2 = vld [vmem:[#allocation7 + $0x30] sm:$0xff] }
  0x3e   :  { %468 = vmatprep.subr.mxu1 %v636_v0  ;;  %484 = vmatprep.mubr.msk.f32.mxu1 %vm637_vm0, %v636_v0  ;;  %v99_v3 = vld [vmem:[#allocation7 + $0x28] sm:$0xff]  ;;  %v215_v4 = vld [vmem:[#allocation8 + $0xf8] sm:$0xff]  ;;  %v214_v5 = vld [vmem:[#allocation8 + $0xf0] sm:$0xff]  ;;  %vm109_vm1 = vcmask 523264  }
  0x3f   :  { %469 = vmatpush3.msra.mxu1 %v101_v1  ;;  %v213_v6 = vld [vmem:[#allocation8 + $0xe8] sm:$0xff]  ;;  %v98_v7 = vld [vmem:[#allocation7 + $0x20] sm:$0xff]  ;;  %351 = vmatprep.subr.mxu0 %v215_v4  ;;  %v211_v9 = vld [vmem:[#allocation8 + $0xd8] sm:$0xff] }
  0x40   :  { %470 = vmatprep.subr.mxu1 %v636_v0  ;;  %v212_v8 = vld [vmem:[#allocation8 + $0xe0] sm:$0xff]  ;;  %352 = vmatpush1.msra.mxu0 %v214_v5  ;;  %v97_v10 = vld [vmem:[#allocation7 + $0x18] sm:$0xff]  ;;  %v210_v11 = vld [vmem:[#allocation8 + $0xd0] sm:$0xff] }
  0x41   :  { %471 = vmatpush3.msra.mxu1 %v100_v2  ;;  %353 = vmatprep.subr.mxu0 %v213_v6  ;;  %v209_v12 = vld [vmem:[#allocation8 + $0xc8] sm:$0xff]  ;;  %v96_v13 = vld [vmem:[#allocation7 + $0x10] sm:$0xff]  ;;  %v208_v14 = vld [vmem:[#allocation8 + $0xc0] sm:$0xff] }
  0x42   :  { %472 = vmatprep.subr.mxu1 %v636_v0  ;;  %354 = vmatpush1.msra.mxu0 %v212_v8  ;;  %v207_v15 = vld [vmem:[#allocation8 + $0xb8] sm:$0xff]  ;;  %v95_v16 = vld [vmem:[#allocation7 + $0x8] sm:$0xff]  ;;  %v206_v17 = vld [vmem:[#allocation8 + $0xb0] sm:$0xff] }
  0x43   :  { %473 = vmatpush3.msra.mxu1 %v99_v3  ;;  %355 = vmatprep.subr.mxu0 %v211_v9  ;;  %v205_v18 = vld [vmem:[#allocation8 + $0xa8] sm:$0xff]  ;;  %v94_v19 = vld [vmem:[#allocation7] sm:$0xff]  ;;  %v93_v21 = vld [vmem:[#allocation5] sm:$0xff] }
  0x44   :  { %474 = vmatprep.subr.mxu1 %v636_v0  ;;  %356 = vmatpush1.msra.mxu0 %v210_v11  ;;  %v204_v20 = vld [vmem:[#allocation8 + $0xa0] sm:$0xff]  ;;  %v203_v22 = vld [vmem:[#allocation8 + $0x98] sm:$0xff]  ;;  %v202_v23 = vld [vmem:[#allocation8 + $0x90] sm:$0xff] }
  0x45   :  { %475 = vmatpush3.msra.mxu1 %v98_v7  ;;  %357 = vmatprep.subr.mxu0 %v209_v12  ;;  %v279_v24 = vld [vmem:[#allocation10 + $0xf8] sm:$0xff]  ;;  %v201_v25 = vld [vmem:[#allocation8 + $0x88] sm:$0xff]  ;;  %v278_v26 = vld [vmem:[#allocation10 + $0xf0] sm:$0xff] }
  0x46   :  { %476 = vmatprep.subr.mxu1 %v636_v0  ;;  %358 = vmatpush1.msra.mxu0 %v208_v14  ;;  %v200_v27 = vld [vmem:[#allocation8 + $0x80] sm:$0xff]  ;;  %v277_v28 = vld [vmem:[#allocation10 + $0xe8] sm:$0xff]  ;;  %v199_v29 = vld [vmem:[#allocation8 + $0x78] sm:$0xff] }
  0x47   :  { %477 = vmatpush3.msra.mxu1 %v97_v10  ;;  %359 = vmatprep.subr.mxu0 %v207_v15  ;;  %v276_v30 = vld [vmem:[#allocation10 + $0xe0] sm:$0xff]  ;;  %v198_v31 = vld [vmem:[#allocation8 + $0x70] sm:$0xff]  ;;  %v275_v32 = vld [vmem:[#allocation10 + $0xd8] sm:$0xff] }
  0x48   :  { %478 = vmatprep.subr.mxu1 %v636_v0  ;;  %360 = vmatpush1.msra.mxu0 %v206_v17  ;;  %v197_v33 = vld [vmem:[#allocation8 + $0x68] sm:$0xff]  ;;  %v274_v34 = vld [vmem:[#allocation10 + $0xd0] sm:$0xff]  ;;  %v196_v35 = vld [vmem:[#allocation8 + $0x60] sm:$0xff] }
  0x49   :  { %479 = vmatpush3.msra.mxu1 %v96_v13  ;;  %361 = vmatprep.subr.mxu0 %v205_v18  ;;  %v273_v36 = vld [vmem:[#allocation10 + $0xc8] sm:$0xff]  ;;  %v195_v37 = vld [vmem:[#allocation8 + $0x58] sm:$0xff]  ;;  %v272_v38 = vld [vmem:[#allocation10 + $0xc0] sm:$0xff] }
  0x4a   :  { %480 = vmatprep.subr.mxu1 %v636_v0  ;;  %362 = vmatpush1.msra.mxu0 %v204_v20  ;;  %v194_v39 = vld [vmem:[#allocation8 + $0x50] sm:$0xff]  ;;  %v271_v40 = vld [vmem:[#allocation10 + $0xb8] sm:$0xff]  ;;  %v193_v41 = vld [vmem:[#allocation8 + $0x48] sm:$0xff] }
  0x4b   :  { %481 = vmatpush3.msra.mxu1 %v95_v16  ;;  %363 = vmatprep.subr.mxu0 %v203_v22  ;;  %v270_v42 = vld [vmem:[#allocation10 + $0xb0] sm:$0xff]  ;;  %v192_v43 = vld [vmem:[#allocation8 + $0x40] sm:$0xff]  ;;  %v269_v44 = vld [vmem:[#allocation10 + $0xa8] sm:$0xff] }
  0x4c   :  { %482 = vmatprep.subr.mxu1 %v636_v0  ;;  %364 = vmatpush1.msra.mxu0 %v202_v23  ;;  %v191_v45 = vld [vmem:[#allocation8 + $0x38] sm:$0xff]  ;;  %v268_v46 = vld [vmem:[#allocation10 + $0xa0] sm:$0xff]  ;;  %v190_v47 = vld [vmem:[#allocation8 + $0x30] sm:$0xff] }
  0x4d   :  { %483 = vmatpush3.msra.mxu1 %v94_v19  ;;  %365 = vmatprep.subr.mxu0 %v201_v25  ;;  %v267_v48 = vld [vmem:[#allocation10 + $0x98] sm:$0xff]  ;;  %v189_v49 = vld [vmem:[#allocation8 + $0x28] sm:$0xff]  ;;  %v266_v50 = vld [vmem:[#allocation10 + $0x90] sm:$0xff] }
  0x4e   :  { %485 = vmatmul.mubr.msk.f32.vlgmr.msra.gmra.mxu1 %vm109_vm1, %v93_v21  ;;  %280 = vmatprep.subr.mxu1 %v279_v24  ;;  %v188_v51 = vld [vmem:[#allocation8 + $0x20] sm:$0xff]  ;;  %v265_v52 = vld [vmem:[#allocation10 + $0x88] sm:$0xff]  ;;  %v187_v53 = vld [vmem:[#allocation8 + $0x18] sm:$0xff] }
  0x4f   :  { %281 = vmatpush1.msra.mxu1 %v278_v26  ;;  %366 = vmatpush1.msra.mxu0 %v200_v27  ;;  %v264_v54 = vld [vmem:[#allocation10 + $0x80] sm:$0xff]  ;;  %v186_v55 = vld [vmem:[#allocation8 + $0x10] sm:$0xff]  ;;  %v263_v56 = vld [vmem:[#allocation10 + $0x78] sm:$0xff] }
  0x50   :  { %282 = vmatprep.subr.mxu1 %v277_v28  ;;  %367 = vmatprep.subr.mxu0 %v199_v29  ;;  %v185_v57 = vld [vmem:[#allocation8 + $0x8] sm:$0xff]  ;;  %v262_v58 = vld [vmem:[#allocation10 + $0x70] sm:$0xff]  ;;  %v184_v59 = vld [vmem:[#allocation8] sm:$0xff] }
  0x51   :  { %283 = vmatpush1.msra.mxu1 %v276_v30  ;;  %368 = vmatpush1.msra.mxu0 %v198_v31  ;;  %v261_v60 = vld [vmem:[#allocation10 + $0x68] sm:$0xff]  ;;  %v247_v61 = vld [vmem:[#allocation8 + $0x1f8] sm:$0xff]  ;;  %v260_v62 = vld [vmem:[#allocation10 + $0x60] sm:$0xff] }
  0x52   :  { %284 = vmatprep.subr.mxu1 %v275_v32  ;;  %369 = vmatprep.subr.mxu0 %v197_v33  ;;  %v246_v63 = vld [vmem:[#allocation8 + $0x1f0] sm:$0xff]  ;;  %v259_v1 = vld [vmem:[#allocation10 + $0x58] sm:$0xff]  ;;  %v245_v2 = vld [vmem:[#allocation8 + $0x1e8] sm:$0xff] }
  0x53   :  { %285 = vmatpush1.msra.mxu1 %v274_v34  ;;  %370 = vmatpush1.msra.mxu0 %v196_v35  ;;  %v258_v3 = vld [vmem:[#allocation10 + $0x50] sm:$0xff]  ;;  %v244_v4 = vld [vmem:[#allocation8 + $0x1e0] sm:$0xff]  ;;  %v257_v5 = vld [vmem:[#allocation10 + $0x48] sm:$0xff] }
  0x54   :  { %286 = vmatprep.subr.mxu1 %v273_v36  ;;  %371 = vmatprep.subr.mxu0 %v195_v37  ;;  %v243_v6 = vld [vmem:[#allocation8 + $0x1d8] sm:$0xff]  ;;  %v256_v7 = vld [vmem:[#allocation10 + $0x40] sm:$0xff]  ;;  %v242_v8 = vld [vmem:[#allocation8 + $0x1d0] sm:$0xff] }
  0x55   :  { %287 = vmatpush1.msra.mxu1 %v272_v38  ;;  %372 = vmatpush1.msra.mxu0 %v194_v39  ;;  %v255_v9 = vld [vmem:[#allocation10 + $0x38] sm:$0xff]  ;;  %v241_v10 = vld [vmem:[#allocation8 + $0x1c8] sm:$0xff]  ;;  %v254_v11 = vld [vmem:[#allocation10 + $0x30] sm:$0xff] }
  0x56   :  { %288 = vmatprep.subr.mxu1 %v271_v40  ;;  %373 = vmatprep.subr.mxu0 %v193_v41  ;;  %v240_v12 = vld [vmem:[#allocation8 + $0x1c0] sm:$0xff]  ;;  %v253_v13 = vld [vmem:[#allocation10 + $0x28] sm:$0xff]  ;;  %v239_v14 = vld [vmem:[#allocation8 + $0x1b8] sm:$0xff] }
  0x57   :  { %289 = vmatpush1.msra.mxu1 %v270_v42  ;;  %374 = vmatpush1.msra.mxu0 %v192_v43  ;;  %v238_v15 = vld [vmem:[#allocation8 + $0x1b0] sm:$0xff]  ;;  %v237_v16 = vld [vmem:[#allocation8 + $0x1a8] sm:$0xff]  ;;  %v236_v17 = vld [vmem:[#allocation8 + $0x1a0] sm:$0xff] }
  0x58   :  { %290 = vmatprep.subr.mxu1 %v269_v44  ;;  %375 = vmatprep.subr.mxu0 %v191_v45  ;;  %v235_v18 = vld [vmem:[#allocation8 + $0x198] sm:$0xff]  ;;  %v234_v19 = vld [vmem:[#allocation8 + $0x190] sm:$0xff]  ;;  %v233_v20 = vld [vmem:[#allocation8 + $0x188] sm:$0xff] }
  0x59   :  { %291 = vmatpush1.msra.mxu1 %v268_v46  ;;  %376 = vmatpush1.msra.mxu0 %v190_v47  ;;  %v232_v21 = vld [vmem:[#allocation8 + $0x180] sm:$0xff]  ;;  %v231_v22 = vld [vmem:[#allocation8 + $0x178] sm:$0xff]  ;;  %v230_v23 = vld [vmem:[#allocation8 + $0x170] sm:$0xff] }
  0x5a   :  { %292 = vmatprep.subr.mxu1 %v267_v48  ;;  %377 = vmatprep.subr.mxu0 %v189_v49  ;;  %v229_v24 = vld [vmem:[#allocation8 + $0x168] sm:$0xff]  ;;  %v228_v25 = vld [vmem:[#allocation8 + $0x160] sm:$0xff]  ;;  %v227_v26 = vld [vmem:[#allocation8 + $0x158] sm:$0xff]  ;;  %v424_v49 = vlaneseq }
  0x5b   :  { %293 = vmatpush1.msra.mxu1 %v266_v50  ;;  %378 = vmatpush1.msra.mxu0 %v188_v51  ;;  %v225_v27 = vld [vmem:[#allocation8 + $0x148] sm:$0xff]  ;;  %v224_v28 = vld [vmem:[#allocation8 + $0x140] sm:$0xff]  ;;  %v223_v29 = vld [vmem:[#allocation8 + $0x138] sm:$0xff] }
  0x5c   :  { %294 = vmatprep.subr.mxu1 %v265_v52  ;;  %379 = vmatprep.subr.mxu0 %v187_v53  ;;  %v222_v30 = vld [vmem:[#allocation8 + $0x130] sm:$0xff]  ;;  %v221_v31 = vld [vmem:[#allocation8 + $0x128] sm:$0xff]  ;;  %v220_v32 = vld [vmem:[#allocation8 + $0x120] sm:$0xff]  ;;  %v425_v50 = vshrl.u32 %v424_v49, 7 }
  0x5d   :  { %295 = vmatpush1.msra.mxu1 %v264_v54  ;;  %380 = vmatpush1.msra.mxu0 %v186_v55  ;;  %v219_v33 = vld [vmem:[#allocation8 + $0x118] sm:$0xff]  ;;  %v252_v34 = vld [vmem:[#allocation10 + $0x20] sm:$0xff]  ;;  %v218_v35 = vld [vmem:[#allocation8 + $0x110] sm:$0xff] }
  0x5e   :  { %296 = vmatprep.subr.mxu1 %v263_v56  ;;  %381 = vmatprep.subr.mxu0 %v185_v57  ;;  %v251_v36 = vld [vmem:[#allocation10 + $0x18] sm:$0xff]  ;;  %v217_v37 = vld [vmem:[#allocation8 + $0x108] sm:$0xff]  ;;  %v250_v38 = vld [vmem:[#allocation10 + $0x10] sm:$0xff]  ;;  %v426_v51 = vsub.s32 0, %v425_v50  ;;  %v430_v53 = vsub.s32 1, %v425_v50 }
  0x5f   :  { %297 = vmatpush1.msra.mxu1 %v262_v58  ;;  %382 = vmatpush1.msra.mxu0 %v184_v59  ;;  %v216_v39 = vld [vmem:[#allocation8 + $0x100] sm:$0xff]  ;;  %v92_v40 = vld [vmem:[#allocation2 + $0x8] sm:$0xff]  ;;  %v249_v41 = vld [vmem:[#allocation10 + $0x8] sm:$0xff] }
  0x60   :  { %298 = vmatprep.subr.mxu1 %v261_v60  ;;  %383 = vmatprep.subr.mxu0 %v247_v61  ;;  %v91_v42 = vld [vmem:[#allocation2] sm:$0xff]  ;;  %v248_v43 = vld [vmem:[#allocation10] sm:$0xff] }
  0x61   :  { %299 = vmatpush1.msra.mxu1 %v260_v62  ;;  %384 = vmatpush2.msra.mxu0 %v246_v63  ;;  %v457_v44 = vld [vmem:[%s722_s3] ss:$0 sm:$0xff]  ;;  %s638_s3 = smov [#allocation11]  }
  0x62   :  { %300 = vmatprep.subr.mxu1 %v259_v1  ;;  %385 = vmatprep.subr.mxu0 %v245_v2  ;;  %v422_v52 = vld [vmem:[%s725_s6] sm:$0x3]  ;;  %s446_s29 = sshll.u32 %s638_s3, 4  ;;  %s447_s29 = int_to_ptr.vmem [resolvable:$true] %s446_s29 }
  0x63   :  { %301 = vmatpush1.msra.mxu1 %v258_v3  ;;  %386 = vmatpush2.msra.mxu0 %v244_v4  ;;  %v427_v55 = vrot.slane %v422_v52, %v426_v51  ;;  %v431_v58 = vrot.slane %v422_v52, %v430_v53  ;;  %s599_s30 = scalar_lea.vmem %s447_s29, 256  ;;  %p604_p12 = scmp.lt.s32.totalorder %s447_s29, %s447_s29 }
  0x64   :  { %302 = vmatprep.subr.mxu1 %v257_v5  ;;  %387 = vmatprep.subr.mxu0 %v243_v6  ;;  %p600_p11 = scmp.ne.s32.totalorder %s447_s29, %s599_s30  ;;  %p605_p13 = scmp.lt.s32.totalorder %s599_s30, %s599_s30 }
  0x65   :  { %303 = vmatpush1.msra.mxu1 %v256_v7  ;;  %388 = vmatpush2.msra.mxu0 %v242_v8 }
  0x66   :  { %304 = vmatprep.subr.mxu1 %v255_v9  ;;  %389 = vmatprep.subr.mxu0 %v241_v10  ;;  %p606_p0 = por %p605_p13, %p604_p12 }
  0x67   :  { %305 = vmatpush1.msra.mxu1 %v254_v11  ;;  %390 = vmatpush2.msra.mxu0 %v240_v12 }
  0x68   :  { %306 = vmatprep.subr.mxu1 %v253_v13  ;;  %391 = vmatprep.subr.mxu0 %v239_v14  ;;  %p607_p1 = pnand %p606_p0, %p600_p11 }
  0x69   :  { %344 = vmatprep.mubr.f32.mxu1 %v636_v0  ;;  %392 = vmatpush2.msra.mxu0 %v238_v15  ;;  %v226_v0 = vld [vmem:[#allocation8 + $0x150] sm:$0xff] }
  0x6a   :  { %393 = vmatprep.subr.mxu0 %v237_v16  ;;  %307 = vmatpush1.msra.mxu1 %v252_v34 }
  0x6b   :  { %394 = vmatpush2.msra.mxu0 %v236_v17  ;;  %308 = vmatprep.subr.mxu1 %v251_v36 }
  0x6c   :  { %395 = vmatprep.subr.mxu0 %v235_v18  ;;  %309 = vmatpush1.msra.mxu1 %v250_v38 }
  0x6d   :  { %396 = vmatpush2.msra.mxu0 %v234_v19  ;;  %415 = vmatprep.mubr.f32.mxu0 %v92_v40 }
  0x6e   :  { %397 = vmatprep.subr.mxu0 %v233_v20  ;;  %310 = vmatprep.subr.mxu1 %v249_v41 }
  0x6f   :  { %398 = vmatpush2.msra.mxu0 %v232_v21  ;;  %311 = vmatpush1.msra.mxu1 %v248_v43 }
  0x70   :  { %399 = vmatprep.subr.mxu0 %v231_v22 }
  0x71   :  { %400 = vmatpush2.msra.mxu0 %v230_v23 }
  0x72   :  { %401 = vmatprep.subr.mxu0 %v229_v24 }
  0x73   :  { %402 = vmatpush2.msra.mxu0 %v228_v25 }
  0x74   :  { %403 = vmatprep.subr.mxu0 %v227_v26 }
  0x75   :  { %404 = vmatpush2.msra.mxu0 %v226_v0 }
  0x76   :  { %405 = vmatprep.subr.mxu0 %v225_v27 }
  0x77   :  { %406 = vmatpush2.msra.mxu0 %v224_v28 }
  0x78   :  { %407 = vmatprep.subr.mxu0 %v223_v29 }
  0x79   :  { %408 = vmatpush2.msra.mxu0 %v222_v30 }
  0x7a   :  { %409 = vmatprep.subr.mxu0 %v221_v31 }
  0x7b   :  { %410 = vmatpush2.msra.mxu0 %v220_v32 }
  0x7c   :  { %411 = vmatprep.subr.mxu0 %v219_v33 }
  0x7d   :  { %412 = vmatpush2.msra.mxu0 %v218_v35 }
  0x7e   :  { %413 = vmatprep.subr.mxu0 %v217_v37 }
  0x7f   :  { %414 = vmatpush2.msra.mxu0 %v216_v39 }
  0x80   :  { %416 = vmatmul.mubr.f32.vlgmr.msra.gmra.mxu0 %v91_v42 }
 0x10e   :  { %v179_v45 = vpop.f32.mrf.mxu1 }
 0x10f   :  { %v180_v46 = vadd.f32 %v457_v44, %v179_v45 }
 0x110   :  { %v486_v47 = vpop.f32.mrf.mxu1 }
 0x111   :  { %v183_v48 = vmax.f32 %v180_v46, 0.0 }
 0x113   :  { %345 = vmatmul.mubr.f32.vlgmr.msra.gmra.mxu1 %v183_v48 }
 0x140   :  { %v417_v54 = vpop.f32.mrf.mxu0 }
 0x142   :  { %v419_v59 = vpop.f32.mrf.mxu0 }
 0x1d3   :  { %v346_v56 = vpop.f32.mrf.mxu1 }
 0x1d4   :  { %v418_v57 = vadd.f32 %v417_v54, %v346_v56 }
 0x1d5   :  { %v348_v60 = vpop.f32.mrf.mxu1 }
 0x1d6   :  { %v434_v61 = vadd.f32 %v427_v55, %v418_v57  ;;  %v420_v62 = vadd.f32 %v419_v59, %v348_v60 }
 0x1d8   :  { %v436_v63 = vmax.f32 %v434_v61, 0.0  ;;  %v435_v1 = vadd.f32 %v431_v58, %v420_v62 }
 0x1da   :  { %438 = vst [vmem:[#allocation11] sm:$0xff] %v436_v63  ;;  %v437_v2 = vmax.f32 %v435_v1, 0.0 }
 0x1dc   :  { %439 = vst [vmem:[#allocation11 + $0x8] sm:$0xff] %v437_v2 }
 0x1dd   :  { %610 = shalt.err (!%p607_p1)
}
 0x1de   :  { %449 = dma.vmem_to_hbm [thread:$0]  %s447_s29, 256, %s726_s7, [#allocation4]  }
 0x1df   :  { %625 = dma.done.wait [#allocation4], 256  }
 0x1e0   :  { %626 = vsyncadd [#allocation4], 4294967040 }
 0x1e1   :  { %453 = vsyncpa [#allocation3], 1 }
 0x1e2   :  { %454 = vsyncpa [#allocation6], 1 }
 0x1e3   :  { %455 = vsyncpa [#allocation9], 1 }
 0x1e4   :  { %456 = vsyncpa [#allocation4], 1 }

</bundles_post_ra>
